<compile_context>
chip_gen: v5e
topology: v5e:2x2
jax: 0.10.0
libtpu: 0.0.40
codegen_flags: <defaults>
</compile_context>

<pallas_src>
import functools

import jax
import jax.numpy as jnp
import numpy as np
from jax.experimental import pallas as pl
from jax.experimental.pallas import tpu as pltpu


def _ohem_kernel(cls_ref, pred_ref, tgt_ref, ins_ref, outs_ref, lbl_ref,
                 lbl_out_ref, ins_out_ref, outs_out_ref, *, roi_per_img):
    # Blocks carry a leading image dim of size 1; drop it.
    x = cls_ref[0]                       # [N, C] f32
    labels = lbl_ref[0]                  # [N, 1] i32
    n, c = x.shape

    # ---- per-roi classification loss: -log softmax(x)[label] = logsumexp(x) - x[label]
    # NOTE: labels are assumed to lie in [0, num_classes), matching the PyTorch gather.
    x_max = jnp.max(x, axis=1, keepdims=True)
    lse = x_max + jnp.log(jnp.sum(jnp.exp(x - x_max), axis=1, keepdims=True))
    onehot = jax.lax.broadcasted_iota(jnp.int32, (n, c), 1) == labels          # [N,C]
    x_lbl = jnp.sum(jnp.where(onehot, x, 0.0), axis=1, keepdims=True)          # [N,1]
    loss_cls = lse - x_lbl                                                     # [N,1]

    # ---- per-roi smooth-L1 bbox loss (sigma = 1.0, summed over coords) ----
    ins = ins_ref[0]                     # [N, 4R]
    outs = outs_ref[0]                   # [N, 4R]
    diff = ins * (pred_ref[0] - tgt_ref[0])
    abs_d = jnp.abs(diff)
    sl1 = jnp.where(abs_d < 1.0, 0.5 * diff * diff, abs_d - 0.5)
    loss_bbox = jnp.sum(outs * sl1, axis=1, keepdims=True)                     # [N,1]

    total = loss_cls + loss_bbox                                               # [N,1]

    # ---- OHEM: keep the `roi_per_img` rois with the largest total loss (per image).
    # rank[i] = #rois that beat roi i in a stable descending sort, computed from an
    # all-pairs comparison.  `total` is spread across lanes with an exact rank-1 f32
    # matmul (entry (i,j) = 1.0 * total[j], exact) to avoid an in-kernel [N,1] transpose.
    ones = jnp.ones((n, 1), jnp.float32)
    total_row = jax.lax.dot_general(ones, total, (((1,), (1,)), ((), ())),
                                    preferred_element_type=jnp.float32)        # [N,N]
    row_idx = jax.lax.broadcasted_iota(jnp.int32, (n, n), 0)
    col_idx = jax.lax.broadcasted_iota(jnp.int32, (n, n), 1)
    beats_me = (total_row > total) | ((total_row == total) & (col_idx < row_idx))
    rank = jnp.sum(beats_me.astype(jnp.int32), axis=1, keepdims=True)          # [N,1]
    keep = rank < roi_per_img                                                  # [N,1]

    # ---- mask out the non-selected rois ----
    lbl_out_ref[0] = jnp.where(keep, labels, jnp.int32(-1))
    keep_f = keep.astype(ins.dtype)
    ins_out_ref[0] = ins * keep_f
    outs_out_ref[0] = outs * keep_f


def _ohem_forward_batched(cls_score, bbox_pred, bbox_targets, inside_ws,
                          outside_ws, labels, *, roi_per_img):
    """Batched forward. Shapes: cls_score [B,N,C], bbox_* [B,N,4R], labels [B,N]."""
    b, n, c = cls_score.shape
    b4 = bbox_pred.shape[-1]
    labels3d = labels.astype(jnp.int32).reshape(b, n, 1)

    kernel = functools.partial(_ohem_kernel, roi_per_img=roi_per_img)
    spec_cls = pl.BlockSpec((1, n, c), lambda i: (i, 0, 0))
    spec_box = pl.BlockSpec((1, n, b4), lambda i: (i, 0, 0))
    spec_lbl = pl.BlockSpec((1, n, 1), lambda i: (i, 0, 0))

    labels_ohem, ins_ohem, outs_ohem = pl.pallas_call(
        kernel,
        grid=(b,),
        in_specs=[spec_cls, spec_box, spec_box, spec_box, spec_box, spec_lbl],
        out_specs=(spec_lbl, spec_box, spec_box),
        out_shape=(
            jax.ShapeDtypeStruct((b, n, 1), jnp.int32),
            jax.ShapeDtypeStruct((b, n, b4), jnp.float32),
            jax.ShapeDtypeStruct((b, n, b4), jnp.float32),
        ),
        # bbox-weight outputs are the inputs times the keep mask -> reuse the buffers.
        input_output_aliases={3: 1, 4: 2},
        compiler_params=pltpu.CompilerParams(dimension_semantics=("parallel",)),
    )(cls_score, bbox_pred, bbox_targets, inside_ws, outside_ws, labels3d)

    return labels_ohem.reshape(b, n), ins_ohem, outs_ohem


class BoxAnnotatorOHEM:
    """JAX/Pallas port of lib/model/rpn/box_annotator_ohem.BoxAnnotatorOHEM (forward only).

    Accepts single-image inputs ([N,C] / [N,4R] / [N]) like the PyTorch module, or
    batched inputs with a leading image dim ([B,N,C] / [B,N,4R] / [B,N])."""

    def __init__(self, num_classes, num_reg_classes, roi_per_img):
        self._num_classes = num_classes
        self._num_reg_classes = num_reg_classes
        self._roi_per_img = roi_per_img
        self._fn = jax.jit(
            functools.partial(_ohem_forward_batched, roi_per_img=roi_per_img))

    def __call__(self, cls_score, bbox_pred, labels, bbox_targets, inside_ws, outside_ws):
        single = cls_score.ndim == 2
        if single:
            cls_score = cls_score[None]
            bbox_pred = bbox_pred[None]
            bbox_targets = bbox_targets[None]
            inside_ws = inside_ws[None]
            outside_ws = outside_ws[None]
            labels = labels[None]
        lbl, ins, outs = self._fn(cls_score, bbox_pred, bbox_targets,
                                  inside_ws, outside_ws, labels)
        if single:
            return lbl[0], ins[0], outs[0]
        return lbl, ins, outs


def _reference_single(cls_score, bbox_pred, labels, bbox_targets, inside_ws,
                      outside_ws, roi_per_img):
    """Pure-JAX single-image reference mirroring the PyTorch forward (same algebra
    as the kernel so tie-breaking matches a stable descending sort)."""
    n = cls_score.shape[0]
    x_max = jnp.max(cls_score, axis=1)
    lse = x_max + jnp.log(jnp.sum(jnp.exp(cls_score - x_max[:, None]), axis=1))
    x_lbl = cls_score[jnp.arange(n), labels]
    loss_cls = lse - x_lbl
    diff = inside_ws * (bbox_pred - bbox_targets)
    abs_d = jnp.abs(diff)
    sl1 = jnp.where(abs_d < 1.0, 0.5 * diff * diff, abs_d - 0.5)
    loss_bbox = jnp.sum(outside_ws * sl1, axis=1)
    total = loss_cls + loss_bbox
    order = jnp.argsort(-total)                      # stable descending sort
    keep = jnp.zeros((n,), bool).at[order[:roi_per_img]].set(True)
    labels_ohem = jnp.where(keep, labels, -1)
    ins = jnp.where(keep[:, None], inside_ws, 0.0)
    outs = jnp.where(keep[:, None], outside_ws, 0.0)
    return labels_ohem, ins, outs


if __name__ == "__main__":
    num_classes = 8
    num_reg_classes = 8
    roi_per_img = 6
    n_rois = 16
    n_images = 2
    b4 = 4 * num_reg_classes

    key = jax.random.PRNGKey(0)
    k1, k2, k3, k4, k5, k6 = jax.random.split(key, 6)
    cls_score = jax.random.normal(k1, (n_images, n_rois, num_classes), jnp.float32)
    bbox_pred = jax.random.normal(k2, (n_images, n_rois, b4), jnp.float32)
    bbox_targets = jax.random.normal(k3, (n_images, n_rois, b4), jnp.float32)
    inside_ws = (jax.random.uniform(k4, (n_images, n_rois, b4)) > 0.5).astype(jnp.float32)
    outside_ws = (jax.random.uniform(k5, (n_images, n_rois, b4)) > 0.5).astype(jnp.float32)
    labels = jax.random.randint(k6, (n_images, n_rois), 0, num_classes, jnp.int32)

    # Reference (computed before the kernel call so aliasing can never interfere).
    refs = [_reference_single(cls_score[b], bbox_pred[b], labels[b], bbox_targets[b],
                              inside_ws[b], outside_ws[b], roi_per_img)
            for b in range(n_images)]

    mod = BoxAnnotatorOHEM(num_classes, num_reg_classes, roi_per_img)

    # Batched path (grid over images).
    labels_ohem, ins_ohem, outs_ohem = mod(
        cls_score, bbox_pred, labels, bbox_targets, inside_ws, outside_ws)
    jax.block_until_ready((labels_ohem, ins_ohem, outs_ohem))

    for b in range(n_images):
        ref_lbl, ref_ins, ref_outs = refs[b]
        np.testing.assert_array_equal(np.asarray(labels_ohem[b]), np.asarray(ref_lbl))
        np.testing.assert_allclose(np.asarray(ins_ohem[b]), np.asarray(ref_ins), atol=1e-6)
        np.testing.assert_allclose(np.asarray(outs_ohem[b]), np.asarray(ref_outs), atol=1e-6)

    # Single-image path (matches the original PyTorch module signature).
    lbl0, ins0, outs0 = mod(cls_score[0], bbox_pred[0], labels[0],
                            bbox_targets[0], inside_ws[0], outside_ws[0])
    jax.block_until_ready((lbl0, ins0, outs0))
    np.testing.assert_array_equal(np.asarray(lbl0), np.asarray(refs[0][0]))
    np.testing.assert_allclose(np.asarray(ins0), np.asarray(refs[0][1]), atol=1e-6)
    np.testing.assert_allclose(np.asarray(outs0), np.asarray(refs[0][2]), atol=1e-6)

    print("KERNEL_OK")
</pallas_src>

<mosaic_0001>
module attributes {stable_mosaic.version = 11 : i64} {
  func.func @_ohem_kernel(%arg0: i32, %arg1: memref<1x16x8xf32, #tpu.memory_space<vmem>>, %arg2: memref<1x16x32xf32, #tpu.memory_space<vmem>>, %arg3: memref<1x16x32xf32, #tpu.memory_space<vmem>>, %arg4: memref<1x16x32xf32, #tpu.memory_space<vmem>>, %arg5: memref<1x16x32xf32, #tpu.memory_space<vmem>>, %arg6: memref<1x16x1xi32, #tpu.memory_space<vmem>>, %arg7: memref<1x16x1xi32, #tpu.memory_space<vmem>>, %arg8: memref<1x16x32xf32, #tpu.memory_space<vmem>>, %arg9: memref<1x16x32xf32, #tpu.memory_space<vmem>>) attributes {dimension_semantics = [#tpu.dimension_semantics<parallel>], iteration_bounds = array<i64: 2>, scalar_prefetch = 0 : i64, scratch_operands = 0 : i64, tpu.core_type = #tpu.core_type<tc>, window_params = [{transform_indices = @transform_0, window_bounds = array<i64: 1, 16, 8>}, {transform_indices = @transform_1, window_bounds = array<i64: 1, 16, 32>}, {transform_indices = @transform_2, window_bounds = array<i64: 1, 16, 32>}, {transform_indices = @transform_3, window_bounds = array<i64: 1, 16, 32>}, {transform_indices = @transform_4, window_bounds = array<i64: 1, 16, 32>}, {transform_indices = @transform_5, window_bounds = array<i64: 1, 16, 1>}, {transform_indices = @transform_6, window_bounds = array<i64: 1, 16, 1>}, {transform_indices = @transform_7, window_bounds = array<i64: 1, 16, 32>}, {transform_indices = @transform_8, window_bounds = array<i64: 1, 16, 32>}]} {
    %c0 = arith.constant 0 : index
    %c0_0 = arith.constant 0 : index
    %c0_1 = arith.constant 0 : index
    %0 = vector.load %arg1[%c0, %c0_0, %c0_1] : memref<1x16x8xf32, #tpu.memory_space<vmem>>, vector<1x16x8xf32>
    %1 = vector.shape_cast %0 : vector<1x16x8xf32> to vector<16x8xf32>
    %c0_2 = arith.constant 0 : index
    %c0_3 = arith.constant 0 : index
    %c0_4 = arith.constant 0 : index
    %2 = vector.load %arg6[%c0_2, %c0_3, %c0_4] : memref<1x16x1xi32, #tpu.memory_space<vmem>>, vector<1x16x1xi32>
    %3 = vector.shape_cast %2 : vector<1x16x1xi32> to vector<16x1xi32>
    %cst = arith.constant dense<0xFF800000> : vector<16xf32>
    %4 = vector.multi_reduction <maximumf>, %1, %cst [1] : vector<16x8xf32> to vector<16xf32>
    %5 = vector.shape_cast %4 : vector<16xf32> to vector<16x1xf32>
    %6 = vector.broadcast %5 : vector<16x1xf32> to vector<16x8xf32>
    %7 = arith.subf %1, %6 : vector<16x8xf32>
    %8 = math.exp %7 : vector<16x8xf32>
    %cst_5 = arith.constant dense<0.000000e+00> : vector<16xf32>
    %9 = vector.multi_reduction <add>, %8, %cst_5 [1] : vector<16x8xf32> to vector<16xf32>
    %10 = vector.shape_cast %9 : vector<16xf32> to vector<16x1xf32>
    %11 = math.log %10 : vector<16x1xf32>
    %12 = arith.addf %5, %11 : vector<16x1xf32>
    %13 = tpu.iota {dimensions = array<i32: 1>} : vector<16x8xi32>
    %14 = vector.broadcast %3 : vector<16x1xi32> to vector<16x8xi32>
    %15 = arith.cmpi eq, %13, %14 : vector<16x8xi32>
    %cst_6 = arith.constant 0.000000e+00 : f32
    %16 = vector.broadcast %cst_6 : f32 to vector<16x8xf32>
    %17 = arith.select %15, %1, %16 : vector<16x8xi1>, vector<16x8xf32>
    %cst_7 = arith.constant dense<0.000000e+00> : vector<16xf32>
    %18 = vector.multi_reduction <add>, %17, %cst_7 [1] : vector<16x8xf32> to vector<16xf32>
    %19 = vector.shape_cast %18 : vector<16xf32> to vector<16x1xf32>
    %20 = arith.subf %12, %19 : vector<16x1xf32>
    %c0_8 = arith.constant 0 : index
    %c0_9 = arith.constant 0 : index
    %c0_10 = arith.constant 0 : index
    %21 = vector.load %arg4[%c0_8, %c0_9, %c0_10] : memref<1x16x32xf32, #tpu.memory_space<vmem>>, vector<1x16x32xf32>
    %22 = vector.shape_cast %21 : vector<1x16x32xf32> to vector<16x32xf32>
    %c0_11 = arith.constant 0 : index
    %c0_12 = arith.constant 0 : index
    %c0_13 = arith.constant 0 : index
    %23 = vector.load %arg5[%c0_11, %c0_12, %c0_13] : memref<1x16x32xf32, #tpu.memory_space<vmem>>, vector<1x16x32xf32>
    %24 = vector.shape_cast %23 : vector<1x16x32xf32> to vector<16x32xf32>
    %c0_14 = arith.constant 0 : index
    %c0_15 = arith.constant 0 : index
    %c0_16 = arith.constant 0 : index
    %25 = vector.load %arg2[%c0_14, %c0_15, %c0_16] : memref<1x16x32xf32, #tpu.memory_space<vmem>>, vector<1x16x32xf32>
    %26 = vector.shape_cast %25 : vector<1x16x32xf32> to vector<16x32xf32>
    %c0_17 = arith.constant 0 : index
    %c0_18 = arith.constant 0 : index
    %c0_19 = arith.constant 0 : index
    %27 = vector.load %arg3[%c0_17, %c0_18, %c0_19] : memref<1x16x32xf32, #tpu.memory_space<vmem>>, vector<1x16x32xf32>
    %28 = vector.shape_cast %27 : vector<1x16x32xf32> to vector<16x32xf32>
    %29 = arith.subf %26, %28 : vector<16x32xf32>
    %30 = arith.mulf %22, %29 : vector<16x32xf32>
    %31 = math.absf %30 : vector<16x32xf32>
    %cst_20 = arith.constant 1.000000e+00 : f32
    %32 = vector.broadcast %cst_20 : f32 to vector<16x32xf32>
    %33 = arith.cmpf olt, %31, %32 : vector<16x32xf32>
    %cst_21 = arith.constant 5.000000e-01 : f32
    %34 = vector.broadcast %cst_21 : f32 to vector<16x32xf32>
    %35 = arith.mulf %34, %30 : vector<16x32xf32>
    %36 = arith.mulf %35, %30 : vector<16x32xf32>
    %cst_22 = arith.constant 5.000000e-01 : f32
    %37 = vector.broadcast %cst_22 : f32 to vector<16x32xf32>
    %38 = arith.subf %31, %37 : vector<16x32xf32>
    %39 = arith.select %33, %36, %38 : vector<16x32xi1>, vector<16x32xf32>
    %40 = arith.mulf %24, %39 : vector<16x32xf32>
    %cst_23 = arith.constant dense<0.000000e+00> : vector<16xf32>
    %41 = vector.multi_reduction <add>, %40, %cst_23 [1] : vector<16x32xf32> to vector<16xf32>
    %42 = vector.shape_cast %41 : vector<16xf32> to vector<16x1xf32>
    %43 = arith.addf %20, %42 : vector<16x1xf32>
    %cst_24 = arith.constant 1.000000e+00 : f32
    %44 = vector.broadcast %cst_24 : f32 to vector<16x1xf32>
    %cst_25 = arith.constant dense<0.000000e+00> : vector<16x16xf32>
    %45 = tpu.matmul %44, %43, %cst_25 {dimension_numbers = #tpu.dot_dimension_numbers<[1], [1], [0], [0], [0, 0, 1, 0], [], []>} : vector<16x1xf32>, vector<16x1xf32>, vector<16x16xf32> -> vector<16x16xf32>
    %46 = tpu.iota {dimensions = array<i32: 0>} : vector<16x16xi32>
    %47 = tpu.iota {dimensions = array<i32: 1>} : vector<16x16xi32>
    %48 = vector.broadcast %43 : vector<16x1xf32> to vector<16x16xf32>
    %49 = arith.cmpf ogt, %45, %48 : vector<16x16xf32>
    %50 = vector.broadcast %43 : vector<16x1xf32> to vector<16x16xf32>
    %51 = arith.cmpf oeq, %45, %50 : vector<16x16xf32>
    %52 = arith.cmpi slt, %47, %46 : vector<16x16xi32>
    %53 = arith.andi %51, %52 : vector<16x16xi1>
    %54 = arith.ori %49, %53 : vector<16x16xi1>
    %55 = arith.extui %54 : vector<16x16xi1> to vector<16x16xi32>
    %cst_26 = arith.constant dense<0> : vector<16xi32>
    %56 = vector.multi_reduction <add>, %55, %cst_26 [1] : vector<16x16xi32> to vector<16xi32>
    %57 = vector.shape_cast %56 : vector<16xi32> to vector<16x1xi32>
    %c6_i32 = arith.constant 6 : i32
    %58 = vector.broadcast %c6_i32 : i32 to vector<16x1xi32>
    %59 = arith.cmpi slt, %57, %58 : vector<16x1xi32>
    %c-1_i32 = arith.constant -1 : i32
    %60 = vector.broadcast %c-1_i32 : i32 to vector<16x1xi32>
    %61 = arith.select %59, %3, %60 : vector<16x1xi1>, vector<16x1xi32>
    %c0_27 = arith.constant 0 : index
    %c0_28 = arith.constant 0 : index
    %c0_29 = arith.constant 0 : index
    %62 = vector.load %arg7[%c0_27, %c0_28, %c0_29] : memref<1x16x1xi32, #tpu.memory_space<vmem>>, vector<1x16x1xi32>
    %63 = vector.shape_cast %62 : vector<1x16x1xi32> to vector<16x1xi32>
    %64 = vector.shape_cast %61 : vector<16x1xi32> to vector<1x16x1xi32>
    tpu.vector_store %arg7[%c0_27, %c0_28, %c0_29], %64 {strides = array<i32>} : memref<1x16x1xi32, #tpu.memory_space<vmem>>, vector<1x16x1xi32>,
    %65 = arith.extui %59 : vector<16x1xi1> to vector<16x1xi32>
    %66 = arith.sitofp %65 : vector<16x1xi32> to vector<16x1xf32>
    %67 = vector.broadcast %66 : vector<16x1xf32> to vector<16x32xf32>
    %68 = arith.mulf %22, %67 : vector<16x32xf32>
    %c0_30 = arith.constant 0 : index
    %c0_31 = arith.constant 0 : index
    %c0_32 = arith.constant 0 : index
    %69 = vector.load %arg8[%c0_30, %c0_31, %c0_32] : memref<1x16x32xf32, #tpu.memory_space<vmem>>, vector<1x16x32xf32>
    %70 = vector.shape_cast %69 : vector<1x16x32xf32> to vector<16x32xf32>
    %71 = vector.shape_cast %68 : vector<16x32xf32> to vector<1x16x32xf32>
    tpu.vector_store %arg8[%c0_30, %c0_31, %c0_32], %71 {strides = array<i32>} : memref<1x16x32xf32, #tpu.memory_space<vmem>>, vector<1x16x32xf32>,
    %72 = vector.broadcast %66 : vector<16x1xf32> to vector<16x32xf32>
    %73 = arith.mulf %24, %72 : vector<16x32xf32>
    %c0_33 = arith.constant 0 : index
    %c0_34 = arith.constant 0 : index
    %c0_35 = arith.constant 0 : index
    %74 = vector.load %arg9[%c0_33, %c0_34, %c0_35] : memref<1x16x32xf32, #tpu.memory_space<vmem>>, vector<1x16x32xf32>
    %75 = vector.shape_cast %74 : vector<1x16x32xf32> to vector<16x32xf32>
    %76 = vector.shape_cast %73 : vector<16x32xf32> to vector<1x16x32xf32>
    tpu.vector_store %arg9[%c0_33, %c0_34, %c0_35], %76 {strides = array<i32>} : memref<1x16x32xf32, #tpu.memory_space<vmem>>, vector<1x16x32xf32>,
    return
  }
  func.func @transform_0(%arg0: i32) -> (i32, i32, i32) {
    %c0_i32 = arith.constant 0 : i32
    %c0_i32_0 = arith.constant 0 : i32
    %c0_i32_1 = arith.constant 0 : i32
    return %arg0, %c0_i32, %c0_i32_0 : i32, i32, i32
  }
  func.func @transform_1(%arg0: i32) -> (i32, i32, i32) {
    %c0_i32 = arith.constant 0 : i32
    %c0_i32_0 = arith.constant 0 : i32
    %c0_i32_1 = arith.constant 0 : i32
    return %arg0, %c0_i32, %c0_i32_0 : i32, i32, i32
  }
  func.func @transform_2(%arg0: i32) -> (i32, i32, i32) {
    %c0_i32 = arith.constant 0 : i32
    %c0_i32_0 = arith.constant 0 : i32
    %c0_i32_1 = arith.constant 0 : i32
    return %arg0, %c0_i32, %c0_i32_0 : i32, i32, i32
  }
  func.func @transform_3(%arg0: i32) -> (i32, i32, i32) {
    %c0_i32 = arith.constant 0 : i32
    %c0_i32_0 = arith.constant 0 : i32
    %c0_i32_1 = arith.constant 0 : i32
    return %arg0, %c0_i32, %c0_i32_0 : i32, i32, i32
  }
  func.func @transform_4(%arg0: i32) -> (i32, i32, i32) {
    %c0_i32 = arith.constant 0 : i32
    %c0_i32_0 = arith.constant 0 : i32
    %c0_i32_1 = arith.constant 0 : i32
    return %arg0, %c0_i32, %c0_i32_0 : i32, i32, i32
  }
  func.func @transform_5(%arg0: i32) -> (i32, i32, i32) {
    %c0_i32 = arith.constant 0 : i32
    %c0_i32_0 = arith.constant 0 : i32
    %c0_i32_1 = arith.constant 0 : i32
    return %arg0, %c0_i32, %c0_i32_0 : i32, i32, i32
  }
  func.func @transform_6(%arg0: i32) -> (i32, i32, i32) {
    %c0_i32 = arith.constant 0 : i32
    %c0_i32_0 = arith.constant 0 : i32
    %c0_i32_1 = arith.constant 0 : i32
    return %arg0, %c0_i32, %c0_i32_0 : i32, i32, i32
  }
  func.func @transform_7(%arg0: i32) -> (i32, i32, i32) {
    %c0_i32 = arith.constant 0 : i32
    %c0_i32_0 = arith.constant 0 : i32
    %c0_i32_1 = arith.constant 0 : i32
    return %arg0, %c0_i32, %c0_i32_0 : i32, i32, i32
  }
  func.func @transform_8(%arg0: i32) -> (i32, i32, i32) {
    %c0_i32 = arith.constant 0 : i32
    %c0_i32_0 = arith.constant 0 : i32
    %c0_i32_1 = arith.constant 0 : i32
    return %arg0, %c0_i32, %c0_i32_0 : i32, i32, i32
  }
}

</mosaic_0001>

<bundles_post_ra>
// kernel: _ohem_forward_batched.1
= control target key start
LH: loop header
LB: loop body
LE: loop exit
PB: predicated region body
PF: predicated region fallthrough
CT: control target
= control target key end

     0   :  { %s910_s27 = smov 0   ;;  %s1020_s0 = inlined_call_operand.vmem [shape: f32[2,16,8], index: 0, kind: input, shape index: {}]   ;;  %s1021_s1 = inlined_call_operand.vmem [shape: f32[2,16,32], index: 1, kind: input, shape index: {}]   ;;  %s1022_s2 = inlined_call_operand.vmem [shape: f32[2,16,32], index: 2, kind: input, shape index: {}]   ;;  %s1023_s3 = inlined_call_operand.vmem [shape: f32[2,16,32], index: 3, kind: input, shape index: {}, may-alias: {3,7}]   ;;  %s1024_s4 = inlined_call_operand.vmem [shape: f32[2,16,32], index: 4, kind: input, shape index: {}, may-alias: {4,8}]   ;;  %s1025_s5 = inlined_call_operand.vmem [shape: s32[2,16,1], index: 5, kind: input, shape index: {}]   ;;  %s1026_s6 = inlined_call_operand.vmem [shape: s32[2,16,1], index: 6, kind: output, shape index: {0}]   ;;  %s1027_s7 = inlined_call_operand.vmem [shape: f32[2,16,32], index: 7, kind: output, shape index: {1}, may-alias: {3,7}]   ;;  %s1028_s8 = inlined_call_operand.vmem [shape: f32[2,16,32], index: 8, kind: output, shape index: {2}, may-alias: {4,8}]  }
   0x1 LB: > { %s789_s28 = sadd.s32 4294967295, %s860_s27   ;;  %p793_p0 = scmp.ge.s32.totalorder %s860_s27, 1  ;;  %s860_s27 = sphi %s910_s27, %s19_s27  }
   0x2   : > { %p317_p1 = scmp.lt.s32.totalorder %s860_s27, 3 }
   0x4   : > { %p318_p2 = pnand %p793_p0, %p317_p1 }
   0x5   : > { %p386_p3 = scmp.lt.s32.totalorder (!%p318_p2), %s789_s28, 1 }
   0x6   : > { %321 = sbr.rel (%p318_p2) target bundleno = 558 (0x22e), region = 44 }
   0xb   : > { %v862_v0 = vmov 0   ;;  %s1030_s28 = smov (!%p386_p3, %s789_s28), 1  ;;  %vm435_vm0 = vcmask 64512   ;;  %vm506_vm2 = vcmask 261120   ;;  %v460_v21 = vlaneseq }
   0xc   : > { %844 = vset.pattern.permute.xlu1 %v862_v0  ;;  %845 = vset.pattern.permute.xlu0 %v862_v0  ;;  %s920_s29 = sshll.u32 %s1030_s28, 4  ;;  %vm515_vm6 = vcmask 7168   ;;  %vm563_vm14 = vcmask 130048  }
   0xd   : > { %s390_s10 = scalar_lea.vmem %s1020_s0, %s920_s29  ;;  %s415_s13 = scalar_lea.vmem %s1025_s5, %s920_s29  ;;  %v968_v28 = vand.u32 127, %v460_v21 }
   0xe   : > { %v432_v1 = vld [vmem:[%s390_s10 + $0x8] sm:$0xff]  ;;  %v934_v4 = vld [vmem:[%s390_s10] sm:$0xff]  ;;  %s395_s16 = scalar_lea.vmem %s1021_s1, %s920_s29  ;;  %s400_s19 = scalar_lea.vmem %s1022_s2, %s920_s29 }
   0xf   : > { %v930_v2 = vld [vmem:[%s415_s13 + $0x8] sm:$0xff]  ;;  %v439_v3 = vsel %vm435_vm0, %v432_v1, -inf  ;;  %v936_v5 = vld [vmem:[%s415_s13] sm:$0xff]  ;;  %v436_v6 = vsel %vm435_vm0, %v934_v4, -inf  ;;  %s405_s22 = scalar_lea.vmem %s1023_s3, %s920_s29  ;;  %s410_s25 = scalar_lea.vmem %s1024_s4, %s920_s29 }
  0x10   : > { %466 = vperm.xlu1 %844, %v930_v2   ;;  %440 = vmax.xlane.f32.xlu0 %v439_v3  ;;  %v485_v7 = vld [vmem:[%s395_s16 + $0x8] sm:$0xff]  ;;  %v484_v17 = vld [vmem:[%s395_s16] sm:$0xff]  ;;  %s420_s30 = scalar_lea.vmem %s1026_s6, %s920_s29  ;;  %s425_s11 = scalar_lea.vmem %s1027_s7, %s920_s29 }
  0x11   : > { %v487_v8 = vld [vmem:[%s400_s19 + $0x8] sm:$0xff]  ;;  %v486_v18 = vld [vmem:[%s400_s19] sm:$0xff]  ;;  %s430_s14 = scalar_lea.vmem %s1028_s8, %s920_s29 }
  0x12   : > { %v489_v9 = vsub.f32 %v485_v7, %v487_v8  ;;  %v953_v10 = vld [vmem:[%s405_s22 + $0x8] sm:$0xff]  ;;  %v488_v20 = vsub.f32 %v484_v17, %v486_v18  ;;  %v963_v23 = vld [vmem:[%s405_s22] sm:$0xff]  ;;  %v549_v7 = vshrl.u32 %v460_v21, 7 }
  0x13   : > { %v960_v16 = vld [vmem:[%s410_s25 + $0x8] sm:$0xff]  ;;  %v971_v34 = vld [vmem:[%s410_s25] sm:$0xff] }
  0x14   : > { %v491_v11 = vmul.f32 %v489_v9, %v953_v10  ;;  %v490_v24 = vmul.f32 %v488_v20, %v963_v23  ;;  %v550_v8 = vadd.s32 8, %v549_v7  ;;  %vm555_vm7 = vcmp.lt.s32.totalorder %v968_v28, %v549_v7 }
  0x16   : > { %v493_v12 = vand.u32 2147483647, %v491_v11  ;;  %v497_v13 = vmul.f32 0.5, %v491_v11  ;;  %v492_v26 = vand.u32 2147483647, %v490_v24  ;;  %v496_v27 = vmul.f32 0.5, %v490_v24 }
  0x17   : > { %vm556_vm11 = vcmp.lt.s32.totalorder %v968_v28, %v550_v8 }
  0x18   : > { %463 = vperm.xlu1 %844, %v936_v5   ;;  %437 = vmax.xlane.f32.xlu0 %v436_v6  ;;  %v499_v14 = vmul.f32 %v497_v13, %v491_v11  ;;  %v813_v15 = vadd.f32 -0.5, %v493_v12  ;;  %vm495_vm1 = vcmp.lt.f32.partialorder %v493_v12, 1.0  ;;  %v498_v29 = vmul.f32 %v496_v27, %v490_v24 }
  0x19   : > { %v812_v30 = vadd.f32 -0.5, %v492_v26  ;;  %vm494_vm3 = vcmp.lt.f32.partialorder %v492_v26, 1.0  ;;  %v863_v6 = vmov 1.0  }
  0x1a   : > { %v503_v19 = vsel %vm495_vm1, %v499_v14, %v813_v15 }
  0x1b   : > { %v505_v22 = vmul.f32 %v503_v19, %v960_v16  ;;  %v502_v35 = vsel %vm494_vm3, %v498_v29, %v812_v30 }
  0x1c   : > { %v504_v39 = vmul.f32 %v502_v35, %v971_v34 }
  0x1d   : > { %v510_v25 = vsel %vm506_vm2, %v505_v22, 0.0 }
  0x1e   : > { %v507_v40 = vsel %vm506_vm2, %v504_v39, 0.0  ;;  %v864_v39 = vmov 0.0  }
  0x42   : > { %511 = vadd.xlane.f32.xlu1 %v510_v25 }
  0x82   : > { %v467_v31 = vpop.permute.xlu1 %466 }
  0x83   : > { %vm469_vm4 = vcmp.eq.s32.totalorder %v968_v28, %v467_v31  ;;  %v441_v32 = vpop.xlane.xlu0 %440 }
  0x84   : > { %v471_v33 = vsel %vm469_vm4, %v432_v1, 0.0  ;;  %v443_v36 = vsub.f32 %v432_v1, %v441_v32 }
  0x85   : > { %v475_v37 = vsel %vm435_vm0, %v471_v33, 0.0 }
  0x86   : > { %476 = vadd.xlane.f32.xlu0 %v475_v37  ;;  %v446_v38 = vmul.f32 1.442695, %v443_v36 }
  0x88   : > { %846 = vpow2.f32 %v446_v38 }
  0x8a   : > { %v464_v47 = vpop.permute.xlu1 %463 }
  0x8b   : > { %v438_v41 = vpop.xlane.xlu0 %437  ;;  %vm468_vm5 = vcmp.eq.s32.totalorder %v968_v28, %v464_v47 }
  0x8c   : > { %v442_v42 = vsub.f32 %v934_v4, %v438_v41  ;;  %v470_v49 = vsel %vm468_vm5, %v934_v4, 0.0 }
  0x8d   : > { %v472_v50 = vsel %vm435_vm0, %v470_v49, 0.0 }
  0x8e   : > { %508 = vadd.xlane.f32.xlu0 %v507_v40  ;;  %v847_v43 = vpop.eup %846  ;;  %v444_v44 = vmul.f32 1.442695, %v442_v42 }
  0x8f   : > { %v451_v45 = vsel %vm435_vm0, %v847_v43, 0.0 }
  0x90   : > { %848 = vpow2.f32 %v444_v44  ;;  %452 = vadd.xlane.f32.xlu2 %v451_v45 }
  0x96   : > { %v849_v46 = vpop.eup %848 }
  0x97   : > { %v448_v48 = vsel %vm435_vm0, %v849_v46, 0.0 }
  0x98   : > { %449 = vadd.xlane.f32.xlu2 %v448_v48 }
  0xa0   : > { %473 = vadd.xlane.f32.xlu2 %v472_v50 }
  0xb5   : > { %v512_v57 = vpop.xlane.xlu1 %511 }
  0xf9   : > { %v477_v55 = vpop.xlane.xlu0 %476 }
 0x101   : > { %v509_v1 = vpop.xlane.xlu0 %508 }
 0x103   : > { %v453_v51 = vpop.xlane.xlu2 %452 }
 0x104   : > { %850 = vlog2.f32 %v453_v51 }
 0x10a   : > { %v851_v52 = vpop.eup %850 }
 0x10b   : > { %v457_v53 = vmul.f32 0.6931472, %v851_v52  ;;  %v450_v54 = vpop.xlane.xlu2 %449 }
 0x10c   : > { %852 = vlog2.f32 %v450_v54 }
 0x10d   : > { %v459_v56 = vadd.f32 %v457_v53, %v441_v32 }
 0x10f   : > { %v479_v58 = vsub.f32 %v459_v56, %v477_v55 }
 0x111   : > { %v514_v59 = vadd.f32 %v512_v57, %v479_v58 }
 0x112   : > { %v853_v60 = vpop.eup %852 }
 0x113   : > { %v455_v61 = vmul.f32 0.6931472, %v853_v60  ;;  %814 = vmatpush.xpose.msk.msra.mxu0 %vm515_vm6, %v514_v59  ;;  %831 = vmatpush.xpose.msk.msra.mxu1 %vm515_vm6, %v514_v59  ;;  %v474_v63 = vpop.xlane.xlu2 %473 }
 0x115   : > { %v458_v62 = vadd.f32 %v455_v61, %v438_v41 }
 0x117   : > { %v478_v3 = vsub.f32 %v458_v62, %v474_v63 }
 0x119   : > { %v513_v4 = vadd.f32 %v509_v1, %v478_v3 }
 0x11b   : > { %815 = vmatpush.xpose.msk.msra.mxu0 %vm515_vm6, %v513_v4  ;;  %832 = vmatpush.xpose.msk.msra.mxu1 %vm515_vm6, %v513_v4 }
 0x11e   : > { %816 = vmatmul.msk.f32.vlgmr.msra.gmra.mxu0 %vm515_vm6, %v863_v6  ;;  %817 = vmatmul.msk.f32.vlgmr.msra.gmra.mxu1 %vm515_vm6, %v863_v6 }
 0x19b   : > { %v542_v9 = vpop.f32.mrf.mxu0  ;;  %v545_v11 = vpop.f32.mrf.mxu1 }
 0x19c   : > { %vm551_vm8 = vcmp.gt.f32.partialorder %v542_v9, %v513_v4  ;;  %vm553_vm9 = vcmp.eq.f32.partialorder %v542_v9, %v513_v4  ;;  %vm554_vm10 = vcmp.eq.f32.partialorder %v545_v11, %v514_v59  ;;  %vm552_vm13 = vcmp.gt.f32.partialorder %v545_v11, %v514_v59 }
 0x19d   : > { %vm557_vm12 = vmand %vm553_vm9, %vm555_vm7 }
 0x19e   : > { %vm559_vm15 = vmor %vm551_vm8, %vm557_vm12 }
 0x19f   : > { %v561_v12 = vsel %vm559_vm15, 1, %v862_v0  ;;  %vm558_vm0 = vmand %vm554_vm10, %vm556_vm11 }
 0x1a0   : > { %vm560_vm1 = vmor %vm552_vm13, %vm558_vm0  ;;  %v564_v13 = vsel %vm563_vm14, %v561_v12, 0 }
 0x1a1   : > { %v562_v14 = vsel %vm560_vm1, 1, %v862_v0  ;;  %v566_v15 = vshrl.u32 %v564_v13, 16  ;;  %v565_v21 = vand.u32 65535, %v564_v13 }
 0x1a2   : > { %v577_v17 = vsel %vm563_vm14, %v562_v14, 0 }
 0x1a3   : > { %v579_v18 = vshrl.u32 %v577_v17, 16  ;;  %v568_v19 = vcvt.s32.f32 %v566_v15  ;;  %v578_v22 = vand.u32 65535, %v577_v17  ;;  %v567_v24 = vcvt.s32.f32 %v565_v21 }
 0x1a5   : > { %v581_v20 = vcvt.s32.f32 %v579_v18  ;;  %571 = vadd.xlane.f32.xlu2 %v568_v19  ;;  %v580_v25 = vcvt.s32.f32 %v578_v22 }
 0x1a7   : > { %584 = vadd.xlane.f32.xlu0 %v581_v20 }
 0x1ad   : > { %569 = vadd.xlane.f32.xlu2 %v567_v24 }
 0x1af   : > { %582 = vadd.xlane.f32.xlu0 %v580_v25 }
 0x218   : > { %v572_v26 = vpop.xlane.xlu2 %571 }
 0x219   : > { %v574_v28 = vcvt.f32.s32 %v572_v26 }
 0x21a   : > { %v585_v27 = vpop.xlane.xlu0 %584 }
 0x21b   : > { %v587_v29 = vcvt.f32.s32 %v585_v27  ;;  %v575_v30 = vshll.u32 %v574_v28, 16 }
 0x21d   : > { %v588_v33 = vshll.u32 %v587_v29, 16 }
 0x220   : > { %v570_v0 = vpop.xlane.xlu2 %569 }
 0x221   : > { %v573_v31 = vcvt.f32.s32 %v570_v0 }
 0x222   : > { %v583_v32 = vpop.xlane.xlu0 %582 }
 0x223   : > { %v586_v35 = vcvt.f32.s32 %v583_v32  ;;  %v576_v36 = vadd.s32 %v575_v30, %v573_v31 }
 0x225   : > { %v589_v37 = vadd.s32 %v588_v33, %v586_v35  ;;  %vm590_vm3 = vcmp.lt.s32.totalorder %v576_v36, 6 }
 0x226   : > { %v592_v38 = vsel %vm590_vm3, %v936_v5, 4294967295  ;;  %v818_v40 = vsel %vm590_vm3, 1.0, %v864_v39 }
 0x227   : > { %vm591_vm4 = vcmp.lt.s32.totalorder %v589_v37, 6  ;;  %594 = vst.msk [vmem:[%s420_s30] sm:$0xff] %vm515_vm6, %v592_v38  ;;  %v600_v41 = vmul.f32 %v818_v40, %v963_v23  ;;  %v604_v45 = vmul.f32 %v818_v40, %v971_v34 }
 0x228   : > { %v593_v42 = vsel %vm591_vm4, %v930_v2, 4294967295  ;;  %v819_v43 = vsel %vm591_vm4, 1.0, %v864_v39 }
 0x229   : > { %595 = vst.msk [vmem:[%s420_s30 + $0x8] sm:$0xff] %vm515_vm6, %v593_v42  ;;  %v601_v5 = vmul.f32 %v819_v43, %v953_v10  ;;  %v605_v44 = vmul.f32 %v819_v43, %v960_v16 }
 0x22a   : > { %602 = vst.msk [vmem:[%s425_s11] sm:$0xff] %vm506_vm2, %v600_v41 }
 0x22b   : > { %603 = vst.msk [vmem:[%s425_s11 + $0x8] sm:$0xff] %vm506_vm2, %v601_v5 }
 0x22c   : > { %607 = vst.msk [vmem:[%s430_s14 + $0x8] sm:$0xff] %vm506_vm2, %v605_v44 }
 0x22d   : > { %606 = vst.msk [vmem:[%s430_s14] sm:$0xff] %vm506_vm2, %v604_v45 }
 0x22e PF: > { %s19_s27 = sadd.s32 1, %s860_s27  }
 0x22f   : > { %p16_p4 = scmp.ge.s32.totalorder %s19_s27, 4  }
 0x231   :  { %18 = sbr.rel (!%p16_p4) target bundleno = 1 (0x1), region = 113 }

</bundles_post_ra>
